<compile_context>
chip_gen: v5e
topology: v5e:2x2
jax: 0.10.0
libtpu: 0.0.40
codegen_flags: <defaults>
</compile_context>

<pallas_src>
import math
import functools

import jax
import jax.numpy as jnp
import numpy as np
from jax.experimental import pallas as pl
from jax.experimental.pallas import tpu as pltpu


def _mha_kernel(x_ref, wqkv_ref, bqkv_ref, wo_ref, bo_ref, o_ref,
                q_scr, k_scr, v_scr, *, num_heads, d_k, tq, seq_len):
    # x_ref:  (1, S, D) bf16      wqkv_ref: (D, 3D) bf16   bqkv_ref: (1, 3D) f32
    # wo_ref: (D, D) bf16         bo_ref:   (1, D) f32     o_ref:    (1, TQ, D)
    # q_scr/k_scr/v_scr: (H, S, d_k) bf16 (Q pre-scaled), persist across q blocks
    D = num_heads * d_k
    qi = pl.program_id(1)
    scale = 1.0 / math.sqrt(d_k)

    # ---- Per-batch setup: one fused QKV projection for the whole sequence. ----
    @pl.when(qi == 0)
    def _():
        xb = x_ref[0]                                                         # (S, D) bf16
        qkv = jnp.dot(xb, wqkv_ref[...],
                      preferred_element_type=jnp.float32) + bqkv_ref[...]     # (S, 3D) f32
        for h in range(num_heads):
            lo = h * d_k
            q_scr[h] = (qkv[:, lo:lo + d_k] * scale).astype(jnp.bfloat16)     # pre-scaled
            k_scr[h] = qkv[:, D + lo:D + lo + d_k].astype(jnp.bfloat16)
            v_scr[h] = qkv[:, 2 * D + lo:2 * D + lo + d_k].astype(jnp.bfloat16)

    # ---- Attention for this query block, batched over all heads. ----
    if tq == seq_len:                      # static (trace-time) branch
        q_blk = q_scr[...]                                                    # (H, TQ, d_k)
    else:
        start = pl.multiple_of(qi * tq, tq)
        q_blk = q_scr[:, pl.ds(start, tq), :]

    k = k_scr[...]                                                            # (H, S, d_k)
    v = v_scr[...]

    s = jnp.einsum("hqd,hkd->hqk", q_blk, k,
                   preferred_element_type=jnp.float32)                        # (H, TQ, S) f32
    s = s - jnp.max(s, axis=-1, keepdims=True)
    p = jnp.exp(s)
    p = p * pl.reciprocal(jnp.sum(p, axis=-1, keepdims=True), approx=True)
    o_heads = jnp.einsum("hqk,hkd->hqd", p.astype(jnp.bfloat16), v,
                         preferred_element_type=jnp.float32)                  # (H, TQ, d_k)

    # Value-level head concat (no VMEM round trip), then ONE K=D output matmul.
    o_b = o_heads.astype(jnp.bfloat16)
    out_cat = jnp.concatenate([o_b[h] for h in range(num_heads)], axis=-1)    # (TQ, D) bf16

    out = jnp.dot(out_cat, wo_ref[...],
                  preferred_element_type=jnp.float32) + bo_ref[...]           # (TQ, D) f32
    o_ref[0] = out.astype(o_ref.dtype)


def _pick_vmem_limit_bytes():
    # Per-chip scoped-VMEM limit with headroom for Mosaic internal scratch:
    # v7x (64 MiB phys) -> ~52 MiB, v5e/v6e (128 MiB phys) -> 112 MiB.
    cap = None
    try:
        info = pltpu.get_tpu_info()
        cap = getattr(info, "vmem_capacity_bytes", None)
    except Exception:
        cap = None
    if not cap:
        cap = 64 * 1024 * 1024  # conservative fallback
    limit = min(int(cap) - 12 * 1024 * 1024, 112 * 1024 * 1024)
    return max(limit, 32 * 1024 * 1024)


def multi_head_attention(x, params, *, num_heads, q_block=None):
    B, S, D = x.shape
    assert D % num_heads == 0
    d_k = D // num_heads
    out_dtype = x.dtype
    wq, bq, wk, bk, wv, bv, wo, bo = params

    # Query-block size: full S when small, else 128.
    # TODO(synk): bump to 256 on v6e/v7x when VMEM allows (MXU is 2x256x256 there).
    if q_block is not None:
        tq = q_block
    else:
        tq = S if S <= 128 else 128
    if S % tq != 0:
        tq = S  # TODO(synk): ragged S falls back to a single query block.
    n_q = S // tq

    # Wrapper-side (free) packing: fused QKV weights, bf16 MXU operands, bf16 x.
    wqkv = jnp.concatenate([wq, wk, wv], axis=1).astype(jnp.bfloat16)   # (D, 3D)
    bqkv = jnp.concatenate([bq, bk, bv], axis=1).astype(jnp.float32)    # (1, 3D)
    wo_b = wo.astype(jnp.bfloat16)
    bo_f = bo.astype(jnp.float32)
    x_b = x.astype(jnp.bfloat16)

    kernel = functools.partial(_mha_kernel, num_heads=num_heads, d_k=d_k,
                               tq=tq, seq_len=S)

    # Advisory cost estimate for XLA scheduling around the custom call.
    flops = (2 * B * S * D * (3 * D)            # fused QKV projection
             + 4 * B * num_heads * S * S * d_k  # QK^T and PV
             + 2 * B * S * D * D)               # output projection
    transcendentals = B * num_heads * S * S     # exp
    bytes_accessed = (B * S * D * 2             # x in (bf16)
                      + B * S * D * 4           # out (f32)
                      + (3 * D * D + D * D) * 2 # bf16 weights
                      + (3 * D + D) * 4)        # f32 biases

    # Constant-index operands: single-buffer (never re-DMA'd across the grid).
    def const_spec(shape):
        return pl.BlockSpec(shape, lambda b, q: (0, 0),
                            pipeline_mode=pl.Buffered(1))

    grid_spec = pltpu.PrefetchScalarGridSpec(
        num_scalar_prefetch=0,
        grid=(B, n_q),
        in_specs=[
            pl.BlockSpec((1, S, D), lambda b, q: (b, 0, 0)),   # x (bf16, full seq / batch)
            const_spec((D, 3 * D)),                            # Wqkv (bf16)
            const_spec((1, 3 * D)),                            # bqkv (f32)
            const_spec((D, D)),                                # Wo (bf16)
            const_spec((1, D)),                                # bo (f32)
        ],
        out_specs=pl.BlockSpec((1, tq, D), lambda b, q: (b, q, 0)),
        scratch_shapes=[
            pltpu.VMEM((num_heads, S, d_k), jnp.bfloat16),     # Q (pre-scaled, bf16)
            pltpu.VMEM((num_heads, S, d_k), jnp.bfloat16),     # K
            pltpu.VMEM((num_heads, S, d_k), jnp.bfloat16),     # V
        ],
    )

    return pl.pallas_call(
        kernel,
        out_shape=jax.ShapeDtypeStruct((B, S, D), out_dtype),
        grid_spec=grid_spec,
        compiler_params=pltpu.CompilerParams(
            dimension_semantics=("parallel", "arbitrary"),
            vmem_limit_bytes=_pick_vmem_limit_bytes(),
        ),
        cost_estimate=pl.CostEstimate(flops=flops,
                                      transcendentals=transcendentals,
                                      bytes_accessed=bytes_accessed),
    )(x_b, wqkv, bqkv, wo_b, bo_f)


def _reference_mha(x, params, *, num_heads):
    # Pure-JAX f32 reference mirroring the PyTorch module semantics.
    wq, bq, wk, bk, wv, bv, wo, bo = params
    B, S, D = x.shape
    d_k = D // num_heads
    q = (x @ wq + bq).reshape(B, S, num_heads, d_k).transpose(0, 2, 1, 3)
    k = (x @ wk + bk).reshape(B, S, num_heads, d_k).transpose(0, 2, 1, 3)
    v = (x @ wv + bv).reshape(B, S, num_heads, d_k).transpose(0, 2, 1, 3)
    scores = jnp.einsum("bhqd,bhkd->bhqk", q, k) / math.sqrt(d_k)
    p = jax.nn.softmax(scores, axis=-1)
    out = jnp.einsum("bhqk,bhkd->bhqd", p, v)
    out = out.transpose(0, 2, 1, 3).reshape(B, S, D)
    return out @ wo + bo


def _make_params(key, D):
    keys = jax.random.split(key, 8)

    def init_linear(kw, kb):
        w = jax.random.normal(kw, (D, D), dtype=jnp.float32) * 0.05
        b = jax.random.normal(kb, (1, D), dtype=jnp.float32) * 0.05
        return w, b

    wq, bq = init_linear(keys[0], keys[1])
    wk, bk = init_linear(keys[2], keys[3])
    wv, bv = init_linear(keys[4], keys[5])
    wo, bo = init_linear(keys[6], keys[7])
    return (wq, bq, wk, bk, wv, bv, wo, bo)


if __name__ == "__main__":
    key = jax.random.PRNGKey(0)
    kx1, kx2, kp = jax.random.split(key, 3)

    # Test 1: small shapes consistent with the module (single query block).
    B, S, D, H = 2, 8, 32, 4
    params = _make_params(kp, D)
    x = jax.random.normal(kx1, (B, S, D), dtype=jnp.float32)

    out = multi_head_attention(x, params, num_heads=H)
    out = jax.block_until_ready(out)
    ref = _reference_mha(x, params, num_heads=H)
    # bf16 MXU operands + approx reciprocal -> loosened tolerance vs f32 reference.
    np.testing.assert_allclose(np.asarray(out), np.asarray(ref), rtol=2e-2, atol=2e-2)

    # Test 2: exercise the multi-query-block (sequence-tiled) path.
    S2 = 16
    x2 = jax.random.normal(kx2, (B, S2, D), dtype=jnp.float32)
    out2 = multi_head_attention(x2, params, num_heads=H, q_block=8)
    out2 = jax.block_until_ready(out2)
    ref2 = _reference_mha(x2, params, num_heads=H)
    np.testing.assert_allclose(np.asarray(out2), np.asarray(ref2), rtol=2e-2, atol=2e-2)

    print("KERNEL_OK")
</pallas_src>

<mosaic_0001>
module attributes {stable_mosaic.version = 11 : i64} {
  func.func @_mha_kernel(%arg0: i32, %arg1: i32, %arg2: memref<1x8x32xbf16, #tpu.memory_space<vmem>>, %arg3: memref<32x96xbf16, #tpu.memory_space<vmem>>, %arg4: memref<1x96xf32, #tpu.memory_space<vmem>>, %arg5: memref<32x32xbf16, #tpu.memory_space<vmem>>, %arg6: memref<1x32xf32, #tpu.memory_space<vmem>>, %arg7: memref<1x8x32xf32, #tpu.memory_space<vmem>>, %arg8: memref<4x8x8xbf16, #tpu.memory_space<vmem>>, %arg9: memref<4x8x8xbf16, #tpu.memory_space<vmem>>, %arg10: memref<4x8x8xbf16, #tpu.memory_space<vmem>>) attributes {dimension_semantics = [#tpu.dimension_semantics<parallel>, #tpu.dimension_semantics<arbitrary>], iteration_bounds = array<i64: 2, 1>, scalar_prefetch = 0 : i64, scratch_operands = 3 : i64, tpu.core_type = #tpu.core_type<tc>, window_params = [{transform_indices = @transform_0, window_bounds = array<i64: 1, 8, 32>}, {pipeline_mode = #tpu.pipeline_mode<synchronous>, transform_indices = @transform_1, window_bounds = array<i64: 32, 96>}, {pipeline_mode = #tpu.pipeline_mode<synchronous>, transform_indices = @transform_2, window_bounds = array<i64: 1, 96>}, {pipeline_mode = #tpu.pipeline_mode<synchronous>, transform_indices = @transform_3, window_bounds = array<i64: 32, 32>}, {pipeline_mode = #tpu.pipeline_mode<synchronous>, transform_indices = @transform_4, window_bounds = array<i64: 1, 32>}, {transform_indices = @transform_5, window_bounds = array<i64: 1, 8, 32>}]} {
    %c0_i32 = arith.constant 0 : i32
    %0 = arith.cmpi eq, %arg1, %c0_i32 : i32
    %1 = arith.extui %0 : i1 to i32
    %c0_i32_0 = arith.constant 0 : i32
    %2 = arith.cmpi ne, %1, %c0_i32_0 : i32
    scf.if %2 {
      %c0_20 = arith.constant 0 : index
      %c0_21 = arith.constant 0 : index
      %c0_22 = arith.constant 0 : index
      %37 = vector.load %arg2[%c0_20, %c0_21, %c0_22] : memref<1x8x32xbf16, #tpu.memory_space<vmem>>, vector<1x8x32xbf16>
      %38 = vector.shape_cast %37 : vector<1x8x32xbf16> to vector<8x32xbf16>
      %c0_23 = arith.constant 0 : index
      %c0_24 = arith.constant 0 : index
      %39 = vector.load %arg3[%c0_23, %c0_24] : memref<32x96xbf16, #tpu.memory_space<vmem>>, vector<32x96xbf16>
      %cst_25 = arith.constant dense<0.000000e+00> : vector<8x96xf32>
      %40 = tpu.matmul %38, %39, %cst_25 {dimension_numbers = #tpu.dot_dimension_numbers<[1], [0], [0], [1], [0, 0, 1, 1], [], []>} : vector<8x32xbf16>, vector<32x96xbf16>, vector<8x96xf32> -> vector<8x96xf32>
      %c0_26 = arith.constant 0 : index
      %c0_27 = arith.constant 0 : index
      %41 = vector.load %arg4[%c0_26, %c0_27] : memref<1x96xf32, #tpu.memory_space<vmem>>, vector<1x96xf32>
      %42 = vector.broadcast %41 : vector<1x96xf32> to vector<8x96xf32>
      %43 = arith.addf %40, %42 : vector<8x96xf32>
      %44 = vector.extract_strided_slice %43 {offsets = [0, 0], sizes = [8, 8], strides = [1, 1]} : vector<8x96xf32> to vector<8x8xf32>
      %cst_28 = arith.constant 0.353553385 : f32
      %45 = vector.broadcast %cst_28 : f32 to vector<8x8xf32>
      %46 = arith.mulf %44, %45 : vector<8x8xf32>
      %47 = arith.truncf %46 : vector<8x8xf32> to vector<8x8xbf16>
      %c0_29 = arith.constant 0 : index
      %c0_30 = arith.constant 0 : index
      %c0_31 = arith.constant 0 : index
      %48 = vector.load %arg8[%c0_29, %c0_30, %c0_31] : memref<4x8x8xbf16, #tpu.memory_space<vmem>>, vector<1x8x8xbf16>
      %49 = vector.shape_cast %48 : vector<1x8x8xbf16> to vector<8x8xbf16>
      %50 = vector.shape_cast %47 : vector<8x8xbf16> to vector<1x8x8xbf16>
      tpu.vector_store %arg8[%c0_29, %c0_30, %c0_31], %50 {strides = array<i32>} : memref<4x8x8xbf16, #tpu.memory_space<vmem>>, vector<1x8x8xbf16>,
      %51 = vector.extract_strided_slice %43 {offsets = [0, 32], sizes = [8, 8], strides = [1, 1]} : vector<8x96xf32> to vector<8x8xf32>
      %52 = arith.truncf %51 : vector<8x8xf32> to vector<8x8xbf16>
      %c0_32 = arith.constant 0 : index
      %c0_33 = arith.constant 0 : index
      %c0_34 = arith.constant 0 : index
      %53 = vector.load %arg9[%c0_32, %c0_33, %c0_34] : memref<4x8x8xbf16, #tpu.memory_space<vmem>>, vector<1x8x8xbf16>
      %54 = vector.shape_cast %53 : vector<1x8x8xbf16> to vector<8x8xbf16>
      %55 = vector.shape_cast %52 : vector<8x8xbf16> to vector<1x8x8xbf16>
      tpu.vector_store %arg9[%c0_32, %c0_33, %c0_34], %55 {strides = array<i32>} : memref<4x8x8xbf16, #tpu.memory_space<vmem>>, vector<1x8x8xbf16>,
      %56 = vector.extract_strided_slice %43 {offsets = [0, 64], sizes = [8, 8], strides = [1, 1]} : vector<8x96xf32> to vector<8x8xf32>
      %57 = arith.truncf %56 : vector<8x8xf32> to vector<8x8xbf16>
      %c0_35 = arith.constant 0 : index
      %c0_36 = arith.constant 0 : index
      %c0_37 = arith.constant 0 : index
      %58 = vector.load %arg10[%c0_35, %c0_36, %c0_37] : memref<4x8x8xbf16, #tpu.memory_space<vmem>>, vector<1x8x8xbf16>
      %59 = vector.shape_cast %58 : vector<1x8x8xbf16> to vector<8x8xbf16>
      %60 = vector.shape_cast %57 : vector<8x8xbf16> to vector<1x8x8xbf16>
      tpu.vector_store %arg10[%c0_35, %c0_36, %c0_37], %60 {strides = array<i32>} : memref<4x8x8xbf16, #tpu.memory_space<vmem>>, vector<1x8x8xbf16>,
      %61 = vector.extract_strided_slice %43 {offsets = [0, 8], sizes = [8, 8], strides = [1, 1]} : vector<8x96xf32> to vector<8x8xf32>
      %cst_38 = arith.constant 0.353553385 : f32
      %62 = vector.broadcast %cst_38 : f32 to vector<8x8xf32>
      %63 = arith.mulf %61, %62 : vector<8x8xf32>
      %64 = arith.truncf %63 : vector<8x8xf32> to vector<8x8xbf16>
      %c1 = arith.constant 1 : index
      %c0_39 = arith.constant 0 : index
      %c0_40 = arith.constant 0 : index
      %65 = vector.load %arg8[%c1, %c0_39, %c0_40] : memref<4x8x8xbf16, #tpu.memory_space<vmem>>, vector<1x8x8xbf16>
      %66 = vector.shape_cast %65 : vector<1x8x8xbf16> to vector<8x8xbf16>
      %67 = vector.shape_cast %64 : vector<8x8xbf16> to vector<1x8x8xbf16>
      tpu.vector_store %arg8[%c1, %c0_39, %c0_40], %67 {strides = array<i32>} : memref<4x8x8xbf16, #tpu.memory_space<vmem>>, vector<1x8x8xbf16>,
      %68 = vector.extract_strided_slice %43 {offsets = [0, 40], sizes = [8, 8], strides = [1, 1]} : vector<8x96xf32> to vector<8x8xf32>
      %69 = arith.truncf %68 : vector<8x8xf32> to vector<8x8xbf16>
      %c1_41 = arith.constant 1 : index
      %c0_42 = arith.constant 0 : index
      %c0_43 = arith.constant 0 : index
      %70 = vector.load %arg9[%c1_41, %c0_42, %c0_43] : memref<4x8x8xbf16, #tpu.memory_space<vmem>>, vector<1x8x8xbf16>
      %71 = vector.shape_cast %70 : vector<1x8x8xbf16> to vector<8x8xbf16>
      %72 = vector.shape_cast %69 : vector<8x8xbf16> to vector<1x8x8xbf16>
      tpu.vector_store %arg9[%c1_41, %c0_42, %c0_43], %72 {strides = array<i32>} : memref<4x8x8xbf16, #tpu.memory_space<vmem>>, vector<1x8x8xbf16>,
      %73 = vector.extract_strided_slice %43 {offsets = [0, 72], sizes = [8, 8], strides = [1, 1]} : vector<8x96xf32> to vector<8x8xf32>
      %74 = arith.truncf %73 : vector<8x8xf32> to vector<8x8xbf16>
      %c1_44 = arith.constant 1 : index
      %c0_45 = arith.constant 0 : index
      %c0_46 = arith.constant 0 : index
      %75 = vector.load %arg10[%c1_44, %c0_45, %c0_46] : memref<4x8x8xbf16, #tpu.memory_space<vmem>>, vector<1x8x8xbf16>
      %76 = vector.shape_cast %75 : vector<1x8x8xbf16> to vector<8x8xbf16>
      %77 = vector.shape_cast %74 : vector<8x8xbf16> to vector<1x8x8xbf16>
      tpu.vector_store %arg10[%c1_44, %c0_45, %c0_46], %77 {strides = array<i32>} : memref<4x8x8xbf16, #tpu.memory_space<vmem>>, vector<1x8x8xbf16>,
      %78 = vector.extract_strided_slice %43 {offsets = [0, 16], sizes = [8, 8], strides = [1, 1]} : vector<8x96xf32> to vector<8x8xf32>
      %cst_47 = arith.constant 0.353553385 : f32
      %79 = vector.broadcast %cst_47 : f32 to vector<8x8xf32>
      %80 = arith.mulf %78, %79 : vector<8x8xf32>
      %81 = arith.truncf %80 : vector<8x8xf32> to vector<8x8xbf16>
      %c2 = arith.constant 2 : index
      %c0_48 = arith.constant 0 : index
      %c0_49 = arith.constant 0 : index
      %82 = vector.load %arg8[%c2, %c0_48, %c0_49] : memref<4x8x8xbf16, #tpu.memory_space<vmem>>, vector<1x8x8xbf16>
      %83 = vector.shape_cast %82 : vector<1x8x8xbf16> to vector<8x8xbf16>
      %84 = vector.shape_cast %81 : vector<8x8xbf16> to vector<1x8x8xbf16>
      tpu.vector_store %arg8[%c2, %c0_48, %c0_49], %84 {strides = array<i32>} : memref<4x8x8xbf16, #tpu.memory_space<vmem>>, vector<1x8x8xbf16>,
      %85 = vector.extract_strided_slice %43 {offsets = [0, 48], sizes = [8, 8], strides = [1, 1]} : vector<8x96xf32> to vector<8x8xf32>
      %86 = arith.truncf %85 : vector<8x8xf32> to vector<8x8xbf16>
      %c2_50 = arith.constant 2 : index
      %c0_51 = arith.constant 0 : index
      %c0_52 = arith.constant 0 : index
      %87 = vector.load %arg9[%c2_50, %c0_51, %c0_52] : memref<4x8x8xbf16, #tpu.memory_space<vmem>>, vector<1x8x8xbf16>
      %88 = vector.shape_cast %87 : vector<1x8x8xbf16> to vector<8x8xbf16>
      %89 = vector.shape_cast %86 : vector<8x8xbf16> to vector<1x8x8xbf16>
      tpu.vector_store %arg9[%c2_50, %c0_51, %c0_52], %89 {strides = array<i32>} : memref<4x8x8xbf16, #tpu.memory_space<vmem>>, vector<1x8x8xbf16>,
      %90 = vector.extract_strided_slice %43 {offsets = [0, 80], sizes = [8, 8], strides = [1, 1]} : vector<8x96xf32> to vector<8x8xf32>
      %91 = arith.truncf %90 : vector<8x8xf32> to vector<8x8xbf16>
      %c2_53 = arith.constant 2 : index
      %c0_54 = arith.constant 0 : index
      %c0_55 = arith.constant 0 : index
      %92 = vector.load %arg10[%c2_53, %c0_54, %c0_55] : memref<4x8x8xbf16, #tpu.memory_space<vmem>>, vector<1x8x8xbf16>
      %93 = vector.shape_cast %92 : vector<1x8x8xbf16> to vector<8x8xbf16>
      %94 = vector.shape_cast %91 : vector<8x8xbf16> to vector<1x8x8xbf16>
      tpu.vector_store %arg10[%c2_53, %c0_54, %c0_55], %94 {strides = array<i32>} : memref<4x8x8xbf16, #tpu.memory_space<vmem>>, vector<1x8x8xbf16>,
      %95 = vector.extract_strided_slice %43 {offsets = [0, 24], sizes = [8, 8], strides = [1, 1]} : vector<8x96xf32> to vector<8x8xf32>
      %cst_56 = arith.constant 0.353553385 : f32
      %96 = vector.broadcast %cst_56 : f32 to vector<8x8xf32>
      %97 = arith.mulf %95, %96 : vector<8x8xf32>
      %98 = arith.truncf %97 : vector<8x8xf32> to vector<8x8xbf16>
      %c3 = arith.constant 3 : index
      %c0_57 = arith.constant 0 : index
      %c0_58 = arith.constant 0 : index
      %99 = vector.load %arg8[%c3, %c0_57, %c0_58] : memref<4x8x8xbf16, #tpu.memory_space<vmem>>, vector<1x8x8xbf16>
      %100 = vector.shape_cast %99 : vector<1x8x8xbf16> to vector<8x8xbf16>
      %101 = vector.shape_cast %98 : vector<8x8xbf16> to vector<1x8x8xbf16>
      tpu.vector_store %arg8[%c3, %c0_57, %c0_58], %101 {strides = array<i32>} : memref<4x8x8xbf16, #tpu.memory_space<vmem>>, vector<1x8x8xbf16>,
      %102 = vector.extract_strided_slice %43 {offsets = [0, 56], sizes = [8, 8], strides = [1, 1]} : vector<8x96xf32> to vector<8x8xf32>
      %103 = arith.truncf %102 : vector<8x8xf32> to vector<8x8xbf16>
      %c3_59 = arith.constant 3 : index
      %c0_60 = arith.constant 0 : index
      %c0_61 = arith.constant 0 : index
      %104 = vector.load %arg9[%c3_59, %c0_60, %c0_61] : memref<4x8x8xbf16, #tpu.memory_space<vmem>>, vector<1x8x8xbf16>
      %105 = vector.shape_cast %104 : vector<1x8x8xbf16> to vector<8x8xbf16>
      %106 = vector.shape_cast %103 : vector<8x8xbf16> to vector<1x8x8xbf16>
      tpu.vector_store %arg9[%c3_59, %c0_60, %c0_61], %106 {strides = array<i32>} : memref<4x8x8xbf16, #tpu.memory_space<vmem>>, vector<1x8x8xbf16>,
      %107 = vector.extract_strided_slice %43 {offsets = [0, 88], sizes = [8, 8], strides = [1, 1]} : vector<8x96xf32> to vector<8x8xf32>
      %108 = arith.truncf %107 : vector<8x8xf32> to vector<8x8xbf16>
      %c3_62 = arith.constant 3 : index
      %c0_63 = arith.constant 0 : index
      %c0_64 = arith.constant 0 : index
      %109 = vector.load %arg10[%c3_62, %c0_63, %c0_64] : memref<4x8x8xbf16, #tpu.memory_space<vmem>>, vector<1x8x8xbf16>
      %110 = vector.shape_cast %109 : vector<1x8x8xbf16> to vector<8x8xbf16>
      %111 = vector.shape_cast %108 : vector<8x8xbf16> to vector<1x8x8xbf16>
      tpu.vector_store %arg10[%c3_62, %c0_63, %c0_64], %111 {strides = array<i32>} : memref<4x8x8xbf16, #tpu.memory_space<vmem>>, vector<1x8x8xbf16>,
    } else {
    }
    %c0 = arith.constant 0 : index
    %c0_1 = arith.constant 0 : index
    %c0_2 = arith.constant 0 : index
    %3 = vector.load %arg8[%c0, %c0_1, %c0_2] : memref<4x8x8xbf16, #tpu.memory_space<vmem>>, vector<4x8x8xbf16>
    %c0_3 = arith.constant 0 : index
    %c0_4 = arith.constant 0 : index
    %c0_5 = arith.constant 0 : index
    %4 = vector.load %arg9[%c0_3, %c0_4, %c0_5] : memref<4x8x8xbf16, #tpu.memory_space<vmem>>, vector<4x8x8xbf16>
    %c0_6 = arith.constant 0 : index
    %c0_7 = arith.constant 0 : index
    %c0_8 = arith.constant 0 : index
    %5 = vector.load %arg10[%c0_6, %c0_7, %c0_8] : memref<4x8x8xbf16, #tpu.memory_space<vmem>>, vector<4x8x8xbf16>
    "tpu.trace_start"() <{level = 10 : i32, message = "hqd,hkd->hqk"}> : () -> ()
    %cst = arith.constant dense<0.000000e+00> : vector<4x8x8xf32>
    %6 = tpu.matmul %3, %4, %cst {dimension_numbers = #tpu.dot_dimension_numbers<[2], [2], [1], [1], [0, 0, 0, 1, 1, 1], [0], [0]>} : vector<4x8x8xbf16>, vector<4x8x8xbf16>, vector<4x8x8xf32> -> vector<4x8x8xf32>
    "tpu.trace_stop"() : () -> ()
    %cst_9 = arith.constant dense<0xFF800000> : vector<4x8xf32>
    %7 = vector.multi_reduction <maximumf>, %6, %cst_9 [2] : vector<4x8x8xf32> to vector<4x8xf32>
    %8 = vector.shape_cast %7 : vector<4x8xf32> to vector<4x8x1xf32>
    %9 = vector.broadcast %8 : vector<4x8x1xf32> to vector<4x8x8xf32>
    %10 = arith.subf %6, %9 : vector<4x8x8xf32>
    %11 = math.exp %10 : vector<4x8x8xf32>
    %cst_10 = arith.constant dense<0.000000e+00> : vector<4x8xf32>
    %12 = vector.multi_reduction <add>, %11, %cst_10 [2] : vector<4x8x8xf32> to vector<4x8xf32>
    %13 = vector.shape_cast %12 : vector<4x8xf32> to vector<4x8x1xf32>
    %14 = tpu.reciprocal %13 {approx = true} : vector<4x8x1xf32> -> vector<4x8x1xf32>
    %15 = vector.broadcast %14 : vector<4x8x1xf32> to vector<4x8x8xf32>
    %16 = arith.mulf %11, %15 : vector<4x8x8xf32>
    %17 = arith.truncf %16 : vector<4x8x8xf32> to vector<4x8x8xbf16>
    "tpu.trace_start"() <{level = 10 : i32, message = "hqk,hkd->hqd"}> : () -> ()
    %cst_11 = arith.constant dense<0.000000e+00> : vector<4x8x8xf32>
    %18 = tpu.matmul %17, %5, %cst_11 {dimension_numbers = #tpu.dot_dimension_numbers<[2], [1], [1], [2], [0, 0, 0, 1, 1, 2], [0], [0]>} : vector<4x8x8xbf16>, vector<4x8x8xbf16>, vector<4x8x8xf32> -> vector<4x8x8xf32>
    "tpu.trace_stop"() : () -> ()
    %19 = arith.truncf %18 : vector<4x8x8xf32> to vector<4x8x8xbf16>
    %20 = vector.extract_strided_slice %19 {offsets = [0, 0, 0], sizes = [1, 8, 8], strides = [1, 1, 1]} : vector<4x8x8xbf16> to vector<1x8x8xbf16>
    %21 = vector.shape_cast %20 : vector<1x8x8xbf16> to vector<8x8xbf16>
    %22 = vector.extract_strided_slice %19 {offsets = [1, 0, 0], sizes = [1, 8, 8], strides = [1, 1, 1]} : vector<4x8x8xbf16> to vector<1x8x8xbf16>
    %23 = vector.shape_cast %22 : vector<1x8x8xbf16> to vector<8x8xbf16>
    %24 = vector.extract_strided_slice %19 {offsets = [2, 0, 0], sizes = [1, 8, 8], strides = [1, 1, 1]} : vector<4x8x8xbf16> to vector<1x8x8xbf16>
    %25 = vector.shape_cast %24 : vector<1x8x8xbf16> to vector<8x8xbf16>
    %26 = vector.extract_strided_slice %19 {offsets = [3, 0, 0], sizes = [1, 8, 8], strides = [1, 1, 1]} : vector<4x8x8xbf16> to vector<1x8x8xbf16>
    %27 = vector.shape_cast %26 : vector<1x8x8xbf16> to vector<8x8xbf16>
    %28 = tpu.concatenate %21, %23, %25, %27 in 1 : vector<8x8xbf16>, vector<8x8xbf16>, vector<8x8xbf16>, vector<8x8xbf16> -> vector<8x32xbf16>
    %c0_12 = arith.constant 0 : index
    %c0_13 = arith.constant 0 : index
    %29 = vector.load %arg5[%c0_12, %c0_13] : memref<32x32xbf16, #tpu.memory_space<vmem>>, vector<32x32xbf16>
    %cst_14 = arith.constant dense<0.000000e+00> : vector<8x32xf32>
    %30 = tpu.matmul %28, %29, %cst_14 {dimension_numbers = #tpu.dot_dimension_numbers<[1], [0], [0], [1], [0, 0, 1, 1], [], []>} : vector<8x32xbf16>, vector<32x32xbf16>, vector<8x32xf32> -> vector<8x32xf32>
    %c0_15 = arith.constant 0 : index
    %c0_16 = arith.constant 0 : index
    %31 = vector.load %arg6[%c0_15, %c0_16] : memref<1x32xf32, #tpu.memory_space<vmem>>, vector<1x32xf32>
    %32 = vector.broadcast %31 : vector<1x32xf32> to vector<8x32xf32>
    %33 = arith.addf %30, %32 : vector<8x32xf32>
    %c0_17 = arith.constant 0 : index
    %c0_18 = arith.constant 0 : index
    %c0_19 = arith.constant 0 : index
    %34 = vector.load %arg7[%c0_17, %c0_18, %c0_19] : memref<1x8x32xf32, #tpu.memory_space<vmem>>, vector<1x8x32xf32>
    %35 = vector.shape_cast %34 : vector<1x8x32xf32> to vector<8x32xf32>
    %36 = vector.shape_cast %33 : vector<8x32xf32> to vector<1x8x32xf32>
    tpu.vector_store %arg7[%c0_17, %c0_18, %c0_19], %36 {strides = array<i32>} : memref<1x8x32xf32, #tpu.memory_space<vmem>>, vector<1x8x32xf32>,
    return
  }
  func.func @transform_0(%arg0: i32, %arg1: i32) -> (i32, i32, i32) {
    %c0_i32 = arith.constant 0 : i32
    %c0_i32_0 = arith.constant 0 : i32
    %c0_i32_1 = arith.constant 0 : i32
    return %arg0, %c0_i32, %c0_i32_0 : i32, i32, i32
  }
  func.func @transform_1(%arg0: i32, %arg1: i32) -> (i32, i32) {
    %c0_i32 = arith.constant 0 : i32
    %c0_i32_0 = arith.constant 0 : i32
    %c0_i32_1 = arith.constant 0 : i32
    return %c0_i32, %c0_i32_0 : i32, i32
  }
  func.func @transform_2(%arg0: i32, %arg1: i32) -> (i32, i32) {
    %c0_i32 = arith.constant 0 : i32
    %c0_i32_0 = arith.constant 0 : i32
    %c0_i32_1 = arith.constant 0 : i32
    return %c0_i32, %c0_i32_0 : i32, i32
  }
  func.func @transform_3(%arg0: i32, %arg1: i32) -> (i32, i32) {
    %c0_i32 = arith.constant 0 : i32
    %c0_i32_0 = arith.constant 0 : i32
    %c0_i32_1 = arith.constant 0 : i32
    return %c0_i32, %c0_i32_0 : i32, i32
  }
  func.func @transform_4(%arg0: i32, %arg1: i32) -> (i32, i32) {
    %c0_i32 = arith.constant 0 : i32
    %c0_i32_0 = arith.constant 0 : i32
    %c0_i32_1 = arith.constant 0 : i32
    return %c0_i32, %c0_i32_0 : i32, i32
  }
  func.func @transform_5(%arg0: i32, %arg1: i32) -> (i32, i32, i32) {
    %c0_i32 = arith.constant 0 : i32
    %c0_i32_0 = arith.constant 0 : i32
    return %arg0, %arg1, %c0_i32 : i32, i32, i32
  }
}

</mosaic_0001>

<bundles_post_ra>
// kernel: tpu_custom_call.1
= control target key start
LH: loop header
LB: loop body
LE: loop exit
PB: predicated region body
PF: predicated region fallthrough
CT: control target
= control target key end

     0   :  { %10 = vsyncpa [#allocation6], 0  ;;  %s1377_s0 = inlined_call_operand.hbm [shape: bf16[2,8,32], index: 0, kind: input, shape index: {}]   ;;  %s1378_s1 = inlined_call_operand.hbm [shape: bf16[32,96], index: 1, kind: input, shape index: {}]   ;;  %s1379_s2 = inlined_call_operand.vmem [shape: f32[1,96], index: 2, kind: input, shape index: {}]   ;;  %s1380_s3 = inlined_call_operand.hbm [shape: bf16[32,32], index: 3, kind: input, shape index: {}]   ;;  %s1381_s4 = inlined_call_operand.vmem [shape: f32[1,32], index: 4, kind: input, shape index: {}]   ;;  %s1382_s5 = inlined_call_operand.hbm [shape: f32[2,8,32], index: 5, kind: output, shape index: {}]  }
   0x1   :  { %12 = vsyncpa [#allocation6 + $0x1], 0 }
   0x2   :  { %13 = vsyncpa [#allocation9], 0 }
   0x3   :  { %14 = vsyncpa [#allocation7], 0 }
   0x4   :  { %16 = vsyncpa [#allocation7 + $0x1], 0  ;;  %s1176_s18 = smov 0   ;;  %s1178_s19 = smov 0  }
   0x5   :  { %s1180_s20 = smov 0   ;;  %s1182_s21 = smov 0  }
   0x6   :  { %s1184_s22 = smov 0   ;;  %s1186_s23 = smov 0  }
   0x7 LB: > { %s786_s24 = sadd.s32 4294967295, %s1126_s23   ;;  %p788_p0 = scmp.ge.s32.totalorder %s1126_s23, 1  ;;  %s1126_s23 = sphi %s1186_s23, %s22_s23   ;;  %s1122_s22 = sphi %s1184_s22, %s1392_s22   ;;  %s1118_s21 = sphi %s1182_s21, %s1391_s21   ;;  %s1114_s20 = sphi %s1180_s20, %s1390_s20   ;;  %s1110_s19 = sphi %s1178_s19, %s1389_s19   ;;  %s1106_s18 = sphi %s1176_s18, %s1388_s18  }
   0x8   : > { %p1210_p1 = scmp.eq.s32.totalorder %s786_s24, 0  ;;  %p177_p2 = scmp.lt.s32.totalorder %s1126_s23, 3 }
   0x9   : > { %s188_s28 = sshll.u32 %s1378_s1, 4  ;;  %s1128_s30 = smov [#allocation8]   ;;  %s189_s28 = int_to_ptr.hbm [resolvable:$true] %s188_s28 }
   0xa   : > { %p1218_p3 = pnand %p788_p0, %p177_p2  ;;  %s190_s6 = sshll.u32 %s1128_s30, 4  ;;  %s191_s6 = int_to_ptr.vmem [resolvable:$true] %s190_s6 }
   0xb   : > { %p791_p6 = scmp.ge.s32.totalorder %s1126_s23, 2  ;;  %s205_s9 = sshll.u32 %s1380_s3, 4  ;;  %s206_s9 = int_to_ptr.hbm [resolvable:$true] %s205_s9 }
   0xc   : > { %p845_p4 = pneg %p1218_p3  ;;  %s1129_s10 = smov 64  }
   0xd   : > { %s1130_s11 = smov 4   ;;  %s1131_s12 = smov [#allocation10]  }
   0xe   : > { %p846_p5 = pnand %p845_p4, %p1210_p1  ;;  %s207_s13 = sshll.u32 %s1131_s12, 4  ;;  %s208_s13 = int_to_ptr.vmem [resolvable:$true] %s207_s13 }
   0xf   : > { %s34_s14 = sadd.s32 1, %s1122_s22  ;;  %s787_s15 = sadd.s32 4294967294, %s1126_s23  }
  0x10   : > { %848 = dma.hbm_to_vmem [thread:$0]  (!%p846_p5), %s189_s28, 256, %s191_s6, [#allocation9], %s1129_s10, %s1129_s10, %s1130_s11  }
  0x11   : > { %851 = dma.hbm_to_vmem [thread:$0]  (!%p846_p5), %s206_s9, 256, %s208_s13, [#allocation9], %s1129_s10, %s1129_s10, %s1130_s11  }
  0x12   : > { %p36_p7 = scmp.ge.s32.totalorder %s34_s14, 2  ;;  %s41_s16 = sadd.s32 1, %s1114_s20 }
  0x13   : > { %p48_p8 = scmp.ne.s32.totalorder %s1114_s20, %s1110_s19  ;;  %p49_p9 = scmp.eq.s32.totalorder %s1126_s23, 0 }
  0x14   : > { %s1394_s14 = smov (%p36_p7, %s34_s14), 0  ;;  %p54_p10 = scmp.ne.s32.totalorder %s1110_s19, %s1106_s18 }
  0x15   : > { %s38_s17 = ssub.s32 %s1122_s22, %s1394_s14  ;;  %p164_p11 = scmp.eq.s32.totalorder %s786_s24, 1 }
  0x16   : > { %p39_p12 = scmp.eq.s32.totalorder %s38_s17, 0  ;;  %p1246_p13 = por %p1210_p1, %p54_p10 }
  0x17   : > { %p1250_p0 = por %p164_p11, %p48_p8  ;;  %p170_p2 = scmp.eq.s32.totalorder %s787_s15, 1 }
  0x18   : > { %s1255_s28 = scalar_select %p39_p12, %s1114_s20, %s41_s16  }
  0x19   : > { %p50_p4 = por %p49_p9, %p48_p8  ;;  %p1257_p5 = por %p170_p2, %p54_p10 }
  0x1a   : > { %s224_s6 = sand.u32 1, %s1114_s20   ;;  %s793_s24 = sshll.u32 %s1122_s22, 2 }
  0x1b   : > { %p862_p7 = scmp.lt.s32.totalorder %s1126_s23, 2  ;;  %s792_s7 = sshll.u32 %s224_s6, 2 }
  0x1c   : > { %s232_s10 = scalar_lea.hbm %s1377_s0, %s793_s24  ;;  %s228_s12 = scalar_lea.vmem [#allocation5], %s792_s7 }
  0x1d   : > { %s234_s11 = sshll.u32 %s232_s10, 4  ;;  %s236_s13 = sshll.u32 %s228_s12, 4  ;;  %s235_s11 = int_to_ptr.hbm [resolvable:$true] %s234_s11  ;;  %s237_s13 = int_to_ptr.vmem [resolvable:$true] %s236_s13 }
  0x1e   : > { %p853_p11 = pnand %p862_p7, %p50_p4  ;;  %s225_s15 = scalar_lea.sflag [#allocation6], %s224_s6 }
  0x1f   : > { %245 = sbr.rel (%p1218_p3) target bundleno = 1076 (0x434), region = 40  ;;  %s1270_s16 = sand.u32 (!%p1218_p3), 1, %s1110_s19  }
  0x20   : > { %855 = dma.hbm_to_vmem [thread:$0]  (!%p853_p11), %s235_s11, 64, %s237_s13, %s225_s15  }
  0x21   : > { %s795_s17 = sshll.u32 (!%p1218_p3), %s1270_s16, 2  ;;  %s248_s8 = scalar_lea.sflag (!%p1218_p3), [#allocation6], %s1270_s16 }
  0x22   : > { %s251_s24 = scalar_lea.vmem (!%p1218_p3), [#allocation5], %s795_s17 }
  0x24   : > { %1093 = dma.done.wait (%p1246_p13), %s248_s8, 64  }
  0x25   : > { %1095 = vsyncadd (%p1246_p13), %s248_s8, 4294967232 }
  0x26   : > { %1097 = dma.done.wait (%p1210_p1), [#allocation9], 512  }
  0x27   : > { %1099 = vsyncadd (%p1210_p1), [#allocation9], 4294966784  ;;  %v830_v0 = vld [vmem:[#allocation8 + $0x8] sm:$0xff]  ;;  %v829_v1 = vld [vmem:[#allocation8] sm:$0xff]  ;;  %vm315_vm0 = vcmask 261120   ;;  %vm334_vm1 = vcmask 60416  }
  0x28   : > { %325 = vmatpush.bf16.msra.mxu0 %v830_v0  ;;  %v294_v2 = vld [vmem:[%s251_s24] sm:$0xf]  ;;  %v932_v3 = vld [vmem:[%s1379_s2] ss:$0 sm:$0xff]  ;;  %s1132_s25 = smov 72   ;;  %s1133_s26 = smov 88  }
  0x29   : > { %s1134_s7 = smov 120   ;;  %s1135_s9 = smov 80   ;;  %vm404_vm2 = vcmask 64512   ;;  %vm532_vm3 = vcmask 1043456   ;;  %vm628_vm4 = vcmask 130048   ;;  %vm631_vm5 = vcmask 195584  }
  0x2a   : > { %s1136_s10 = smov 104   ;;  %s1137_s11 = smov 112  }
  0x2b   : > { %s1138_s12 = smov 96   ;;  %s1139_s13 = smov 48  }
  0x2c   : > { %326 = vmatpush.bf16.msra.mxu0 %v829_v1  ;;  %s1140_s15 = smov 64   ;;  %s1141_s17 = smov 56  }
  0x2d   : > { %s1142_s8 = smov 40   ;;  %s1143_s24 = smov 8  }
  0x2e   : > { %s1144_s29 = smov 16   ;;  %s1145_s6 = smov 24  }
  0x2f   : > { %807 = vmatmul.msk.bf16.vlgmr.msra.gmra.mxu0 %vm315_vm0, %v294_v2 }
  0xac   : > { %v328_v4 = vpop.f32.mrf.mxu0 }
  0xad   : > { %v329_v5 = vadd.f32 %v932_v3, %v328_v4 }
  0xaf   : > { %v332_v6 = vmul.f32 0.35355338, %v329_v5  ;;  %v1286_v7 = vpack.c.bf16 %v329_v5, %v329_v5 }
  0xb1   : > { %v333_v8 = vpack.c.bf16 %v332_v6, %v332_v6  ;;  %382 = vrot.lane.b32.xlu2 %v1286_v7, %s1132_s25  ;;  %352 = vrot.lane.b32.xlu0 %v1286_v7, %s1133_s26  ;;  %s826_s25 = sshll.u32 %s1118_s21, 3  ;;  %s798_s26 = sshll.u32 %s1270_s16, 3 }
  0xb2   : > { %s672_s21 = scalar_lea.sflag [#allocation7], %s1270_s16 }
  0xb3   : > { %335 = vst.msk [vmem:[#allocation2] sm:$0xf] %vm334_vm1, %v333_v8  ;;  %347 = vrot.lane.b32.xlu1 %v333_v8, %s1134_s7 }
  0xb4   : > { %v330_v9 = vpop.f32.mrf.mxu0 }
  0xb9   : > { %367 = vrot.lane.b32.xlu0 %v1286_v7, %s1135_s9  ;;  %377 = vrot.lane.b32.xlu2 %v333_v8, %s1136_s10  ;;  %s683_s10 = scalar_lea.hbm %s1382_s5, %s826_s25  ;;  %s1060_s25 = scalar_lea.hbm %s1382_s5, 16 }
  0xba   : > { %v392_v28 = vld [vmem:[#allocation2] sm:$0xf] }
  0xbb   : > { %362 = vrot.lane.b32.xlu1 %v333_v8, %s1137_s11 }
  0xc1   : > { %338 = vrot.lane.b32.xlu0 %v1286_v7, %s1138_s12 }
 0x10b   : > { %v383_v10 = vpop.permute.xlu2 %382 }
 0x10c   : > { %386 = vst.msk [vmem:[#allocation3 + $0xc] sm:$0xf] %vm334_vm1, %v383_v10 }
 0x113   : > { %v378_v11 = vpop.permute.xlu2 %377  ;;  %v399_v12 = vld [vmem:[#allocation3 + $0xc] sm:$0xf] }
 0x114   : > { %381 = vst.msk [vmem:[#allocation2 + $0xc] sm:$0xf] %vm334_vm1, %v378_v11  ;;  %v466_v13 = vsel %vm404_vm2, %v399_v12, 0 }
 0x115   : > { %475 = vmatpush.bf16.xpose.msrb.mxu0 %v466_v13 }
 0x11b   : > { %v395_v14 = vld [vmem:[#allocation2 + $0xc] sm:$0xf] }
 0x11c   : > { %811 = vmatmul.msk.bf16.vlgmr.msrb.gmra.mxu0 %vm404_vm2, %v395_v14 }
 0x123   : > { %v353_v15 = vpop.permute.xlu0 %352 }
 0x124   : > { %356 = vst.msk [vmem:[#allocation3 + $0x4] sm:$0xf] %vm334_vm1, %v353_v15 }
 0x125   : > { %v348_v16 = vpop.permute.xlu1 %347 }
 0x126   : > { %351 = vst.msk [vmem:[#allocation2 + $0x4] sm:$0xf] %vm334_vm1, %v348_v16 }
 0x12b   : > { %v368_v17 = vpop.permute.xlu0 %367  ;;  %v397_v18 = vld [vmem:[#allocation3 + $0x4] sm:$0xf] }
 0x12c   : > { %371 = vst.msk [vmem:[#allocation3 + $0x8] sm:$0xf] %vm334_vm1, %v368_v17  ;;  %v428_v19 = vsel %vm404_vm2, %v397_v18, 0 }
 0x12d   : > { %437 = vmatpush.bf16.xpose.msra.mxu2 %v428_v19  ;;  %v363_v20 = vpop.permute.xlu1 %362  ;;  %v393_v22 = vld [vmem:[#allocation2 + $0x4] sm:$0xf] }
 0x12e   : > { %366 = vst.msk [vmem:[#allocation2 + $0x8] sm:$0xf] %vm334_vm1, %v363_v20 }
 0x133   : > { %v339_v21 = vpop.permute.xlu0 %338  ;;  %v398_v23 = vld [vmem:[#allocation3 + $0x8] sm:$0xf] }
 0x134   : > { %341 = vst.msk [vmem:[#allocation3] sm:$0xf] %vm334_vm1, %v339_v21  ;;  %809 = vmatmul.msk.bf16.vlgmr.msra.gmra.mxu2 %vm404_vm2, %v393_v22  ;;  %v447_v24 = vsel %vm404_vm2, %v398_v23, 0 }
 0x135   : > { %456 = vmatpush.bf16.xpose.msra.mxu3 %v447_v24  ;;  %v394_v25 = vld [vmem:[#allocation2 + $0x8] sm:$0xf] }
 0x13b   : > { %v396_v26 = vld [vmem:[#allocation3] sm:$0xf] }
 0x13c   : > { %810 = vmatmul.msk.bf16.vlgmr.msra.gmra.mxu3 %vm404_vm2, %v394_v25  ;;  %v409_v27 = vsel %vm404_vm2, %v396_v26, 0 }
 0x13d   : > { %418 = vmatpush.bf16.xpose.msra.mxu1 %v409_v27 }
 0x144   : > { %808 = vmatmul.msk.bf16.vlgmr.msra.gmra.mxu1 %vm404_vm2, %v392_v28 }
 0x199   : > { %v477_v29 = vpop.f32.mrf.mxu0 }
 0x19a   : > { %v490_v30 = vsel %vm404_vm2, %v477_v29, -inf }
 0x19b   : > { %491 = vmax.xlane.f32.xlu0 %v490_v30 }
 0x1a1   : > { %v479_v31 = vpop.f32.mrf.mxu0 }
 0x1af   : > { %372 = vrot.lane.b32.xlu0 %v1286_v7, %s1139_s13  ;;  %s288_s13 = scalar_lea.vmem [#allocation11], %s798_s26 }
 0x1b7   : > { %342 = vrot.lane.b32.xlu0 %v1286_v7, %s1140_s15  ;;  %v439_v32 = vpop.f32.mrf.mxu2  ;;  %s685_s15 = sshll.u32 %s288_s13, 4  ;;  %s686_s15 = int_to_ptr.vmem [resolvable:$true] %s685_s15 }
 0x1b8   : > { %v484_v33 = vsel %vm404_vm2, %v439_v32, -inf }
 0x1b9   : > { %485 = vmax.xlane.f32.xlu1 %v484_v33 }
 0x1bf   : > { %v441_v34 = vpop.f32.mrf.mxu2  ;;  %v458_v35 = vpop.f32.mrf.mxu3 }
 0x1c0   : > { %v487_v36 = vsel %vm404_vm2, %v458_v35, -inf }
 0x1c1   : > { %488 = vmax.xlane.f32.xlu2 %v487_v36  ;;  %v420_v37 = vpop.f32.mrf.mxu1 }
 0x1c2   : > { %v481_v39 = vsel %vm404_vm2, %v420_v37, -inf }
 0x1c7   : > { %v460_v38 = vpop.f32.mrf.mxu3 }
 0x1c9   : > { %482 = vmax.xlane.f32.xlu2 %v481_v39  ;;  %v422_v40 = vpop.f32.mrf.mxu1 }
 0x1d2   : > { %357 = vrot.lane.b32.xlu1 %v1286_v7, %s1141_s17  ;;  %s687_s17 = sshll.u32 %s683_s10, 4  ;;  %s688_s17 = int_to_ptr.hbm [resolvable:$true] %s687_s17 }
 0x20e   : > { %v492_v41 = vpop.xlane.xlu0 %491 }
 0x20f   : > { %v496_v42 = vsub.f32 %v477_v29, %v492_v41 }
 0x211   : > { %v503_v43 = vmul.f32 1.442695, %v496_v42  ;;  %v832_v42 = vld [vmem:[#allocation10 + $0x8] sm:$0xff] }
 0x213   : > { %934 = vpow2.f32 %v503_v43  ;;  %v831_v43 = vld [vmem:[#allocation10] sm:$0xff] }
 0x219   : > { %v935_v44 = vpop.eup %934 }
 0x21a   : > { %v514_v45 = vsel %vm404_vm2, %v935_v44, 0.0 }
 0x21b   : > { %515 = vadd.xlane.f32.xlu1 %v514_v45 }
 0x221   : > { %v373_v46 = vpop.permute.xlu0 %372 }
 0x222   : > { %376 = vst.msk [vmem:[#allocation4 + $0x8] sm:$0xf] %vm334_vm1, %v373_v46 }
 0x229   : > { %v343_v47 = vpop.permute.xlu0 %342  ;;  %v402_v48 = vld [vmem:[#allocation4 + $0x8] sm:$0xf] }
 0x22a   : > { %345 = vst.msk [vmem:[#allocation4] sm:$0xf] %vm334_vm1, %v343_v47  ;;  %v572_v49 = vsel %vm532_vm3, %v402_v48, 0 }
 0x22b   : > { %581 = vmatpush.bf16.msrb.mxu3 %v572_v49 }
 0x22c   : > { %v486_v50 = vpop.xlane.xlu1 %485 }
 0x22d   : > { %v494_v51 = vsub.f32 %v439_v32, %v486_v50 }
 0x22f   : > { %v499_v52 = vmul.f32 1.442695, %v494_v51  ;;  %v933_v51 = vld [vmem:[%s1381_s4] ss:$0 sm:$0xff] }
 0x231   : > { %936 = vpow2.f32 %v499_v52  ;;  %v400_v53 = vld [vmem:[#allocation4] sm:$0xf] }
 0x232   : > { %v534_v54 = vsel %vm532_vm3, %v400_v53, 0 }
 0x233   : > { %543 = vmatpush.bf16.msrb.mxu1 %v534_v54 }
 0x234   : > { %v489_v55 = vpop.xlane.xlu2 %488 }
 0x235   : > { %v495_v56 = vsub.f32 %v458_v35, %v489_v55 }
 0x237   : > { %v937_v57 = vpop.eup %936  ;;  %v501_v58 = vmul.f32 1.442695, %v495_v56  ;;  %663 = vmatpush.bf16.msra.mxu1 %v832_v42 }
 0x238   : > { %v508_v59 = vsel %vm404_vm2, %v937_v57, 0.0 }
 0x239   : > { %938 = vpow2.f32 %v501_v58  ;;  %509 = vadd.xlane.f32.xlu2 %v508_v59 }
 0x23b   : > { %664 = vmatpush.bf16.msra.mxu1 %v831_v43 }
 0x23c   : > { %v483_v60 = vpop.xlane.xlu2 %482 }
 0x23d   : > { %v493_v61 = vsub.f32 %v420_v37, %v483_v60 }
 0x23f   : > { %v939_v62 = vpop.eup %938  ;;  %v497_v63 = vmul.f32 1.442695, %v493_v61 }
 0x240   : > { %v511_v0 = vsel %vm404_vm2, %v939_v62, 0.0 }
 0x241   : > { %940 = vpow2.f32 %v497_v63  ;;  %512 = vadd.xlane.f32.xlu2 %v511_v0 }
 0x244   : > { %v358_v1 = vpop.permute.xlu1 %357 }
 0x245   : > { %361 = vst.msk [vmem:[#allocation4 + $0x4] sm:$0xf] %vm334_vm1, %v358_v1 }
 0x247   : > { %v941_v2 = vpop.eup %940 }
 0x248   : > { %v505_v3 = vsel %vm404_vm2, %v941_v2, 0.0 }
 0x249   : > { %506 = vadd.xlane.f32.xlu0 %v505_v3 }
 0x24c   : > { %v401_v4 = vld [vmem:[#allocation4 + $0x4] sm:$0xf] }
 0x24d   : > { %v553_v5 = vsel %vm532_vm3, %v401_v4, 0 }
 0x24e   : > { %562 = vmatpush.bf16.msrb.mxu2 %v553_v5 }
 0x259   : > { %387 = vrot.lane.b32.xlu2 %v1286_v7, %s1142_s8  ;;  %s1054_s8 = sshra.s32 %s688_s17, 4  ;;  %s1055_s8 = int_to_ptr.hbm [resolvable:$true] %s1054_s8 }
 0x25a   : > { %p1061_p9 = scmp.lt.s32.totalorder %s1055_s8, %s1382_s5 }
 0x28e   : > { %v516_v12 = vpop.xlane.xlu1 %515 }
 0x2ac   : > { %v510_v6 = vpop.xlane.xlu2 %509 }
 0x2ad   : > { %942 = vrcp.f32 %v510_v6 }
 0x2b3   : > { %v943_v8 = vpop.eup %942 }
 0x2b4   : > { %v522_v9 = vmul.f32 %v943_v8, %v937_v57  ;;  %v513_v10 = vpop.xlane.xlu2 %512 }
 0x2b5   : > { %944 = vrcp.f32 %v513_v10 }
 0x2b6   : > { %v526_v11 = vpack.c.bf16 %v522_v9, %v522_v9  ;;  %946 = vrcp.f32 %v516_v12 }
 0x2b8   : > { %813 = vmatmul.msk.bf16.vlgmr.msrb.gmra.mxu2 %vm404_vm2, %v526_v11 }
 0x2bb   : > { %v945_v13 = vpop.eup %944 }
 0x2bc   : > { %v523_v14 = vmul.f32 %v945_v13, %v939_v62  ;;  %v507_v15 = vpop.xlane.xlu0 %506  ;;  %v388_v16 = vpop.permute.xlu2 %387 }
 0x2bd   : > { %948 = vrcp.f32 %v507_v15  ;;  %391 = vst.msk [vmem:[#allocation4 + $0xc] sm:$0xf] %vm334_vm1, %v388_v16  ;;  %v947_v7 = vpop.eup %946 }
 0x2be   : > { %v527_v17 = vpack.c.bf16 %v523_v14, %v523_v14  ;;  %v524_v19 = vmul.f32 %v947_v7, %v935_v44 }
 0x2c0   : > { %814 = vmatmul.msk.bf16.vlgmr.msrb.gmra.mxu3 %vm404_vm2, %v527_v17  ;;  %v528_v24 = vpack.c.bf16 %v524_v19, %v524_v19 }
 0x2c3   : > { %v949_v18 = vpop.eup %948 }
 0x2c4   : > { %v521_v20 = vmul.f32 %v949_v18, %v941_v2  ;;  %v403_v21 = vld [vmem:[#allocation4 + $0xc] sm:$0xf] }
 0x2c5   : > { %v591_v22 = vsel %vm532_vm3, %v403_v21, 0 }
 0x2c6   : > { %v525_v23 = vpack.c.bf16 %v521_v20, %v521_v20  ;;  %600 = vmatpush.bf16.msra.mxu0 %v591_v22 }
 0x2c8   : > { %812 = vmatmul.msk.bf16.vlgmr.msrb.gmra.mxu1 %vm404_vm2, %v525_v23 }
 0x2c9   : > { %815 = vmatmul.msk.bf16.vlgmr.msra.gmra.mxu0 %vm404_vm2, %v528_v24 }
 0x33b   : > { %v564_v25 = vpop.f32.mrf.mxu2 }
 0x33c   : > { %v607_v26 = vpack.c.bf16 %v564_v25, %v564_v25 }
 0x33e   : > { %v611_v27 = vunpack.c.l.b16 %v607_v26 }
 0x340   : > { %v612_v28 = vpack.c.b16 %v611_v27, %v611_v27 }
 0x342   : > { %613 = vrot.lane.b32.xlu2 %v612_v28, %s1143_s24  ;;  %s1056_s24 = scalar_lea.hbm %s1055_s8, 8 }
 0x343   : > { %v566_v29 = vpop.f32.mrf.mxu2  ;;  %v583_v30 = vpop.f32.mrf.mxu3  ;;  %p1057_p1 = scmp.ne.s32.totalorder %s1055_s8, %s1056_s24  ;;  %p1062_p10 = scmp.lt.s32.totalorder %s1060_s25, %s1056_s24 }
 0x344   : > { %v608_v31 = vpack.c.bf16 %v583_v30, %v583_v30 }
 0x345   : > { %v545_v32 = vpop.f32.mrf.mxu1  ;;  %p1058_p3 = pnand %p1057_p1, %p1250_p0  ;;  %p1063_p12 = por %p1062_p10, %p1061_p9 }
 0x346   : > { %v616_v33 = vunpack.c.l.b16 %v608_v31  ;;  %v602_v34 = vpop.f32.mrf.mxu0  ;;  %v606_v46 = vpack.c.bf16 %v545_v32, %v545_v32 }
 0x347   : > { %v609_v36 = vpack.c.bf16 %v602_v34, %v602_v34  ;;  %p1059_p8 = pneg %p1058_p3 }
 0x348   : > { %v617_v35 = vpack.c.b16 %v616_v33, %v616_v33 }
 0x349   : > { %v621_v38 = vunpack.c.l.b16 %v609_v36  ;;  %p1064_p13 = pnand %p1063_p12, %p1059_p8 }
 0x34a   : > { %618 = vrot.lane.b32.xlu2 %v617_v35, %s1144_s29 }
 0x34b   : > { %v585_v37 = vpop.f32.mrf.mxu3  ;;  %v622_v41 = vpack.c.b16 %v621_v38, %v621_v38 }
 0x34d   : > { %v547_v39 = vpop.f32.mrf.mxu1 }
 0x34e   : > { %v604_v40 = vpop.f32.mrf.mxu0 }
 0x352   : > { %623 = vrot.lane.b32.xlu2 %v622_v41, %s1145_s6 }
 0x39c   : > { %v614_v44 = vpop.permute.xlu2 %613 }
 0x39d   : > { %v627_v47 = vsel %vm404_vm2, %v606_v46, %v614_v44 }
 0x3a4   : > { %v619_v45 = vpop.permute.xlu2 %618 }
 0x3a5   : > { %v630_v48 = vsel %vm628_vm4, %v627_v47, %v619_v45 }
 0x3ac   : > { %v624_v49 = vpop.permute.xlu2 %623 }
 0x3ad   : > { %v633_v50 = vsel %vm631_vm5, %v630_v48, %v624_v49 }
 0x3ae   : > { %824 = vmatmul.msk.bf16.vlgmr.msra.gmra.mxu1 %vm315_vm0, %v633_v50 }
 0x42b   : > { %v666_v52 = vpop.f32.mrf.mxu1 }
 0x42c   : > { %v667_v53 = vadd.f32 %v933_v51, %v666_v52 }
 0x42e   : > { %670 = vst.msk [vmem:[%s288_s13] sm:$0xff] %vm315_vm0, %v667_v53 }
 0x42f   : > { %1067 = shalt.err (!%p1064_p13)
}
 0x430   : > { %843 = dma.vmem_to_hbm [thread:$0]  (%p1250_p0), %s686_s15, 128, %s688_s17, %s672_s21  }
 0x433   : > { %v668_v54 = vpop.f32.mrf.mxu1 }
 0x434 PF: > { %s699_s16 = sand.u32 1, %s1106_s18   ;;  %p857_p2 = pnand %p791_p6, %p1257_p5 }
 0x435   : > { %s700_s9 = scalar_lea.sflag [#allocation7], %s699_s16 }
 0x436   : > { %p858_p4 = pneg %p857_p2 }
 0x438   : > { %1101 = dma.done.wait (%p858_p4), %s700_s9, 128  }
 0x439   : > { %1103 = vsyncadd (%p858_p4), %s700_s9, 4294967168  ;;  %s22_s23 = sadd.s32 1, %s1126_s23   ;;  %s1388_s18 = smov %s1110_s19 }
 0x43a   : > { %p19_p7 = scmp.ge.s32.totalorder %s22_s23, 4   ;;  %s1389_s19 = smov %s1114_s20 }
 0x43b   : > { %s1390_s20 = smov %s1255_s28  ;;  %s1391_s21 = smov %s1122_s22 }
 0x43c   : > { %s1392_s22 = smov %s1394_s14  ;;  %21 = sbr.rel (!%p19_p7) target bundleno = 7 (0x7), region = 106 }
 0x441   :  { %706 = vsyncpa [#allocation6], 1 }
 0x442   :  { %708 = vsyncpa [#allocation6 + $0x1], 1 }
 0x443   :  { %709 = vsyncpa [#allocation9], 1 }
 0x444   :  { %710 = vsyncpa [#allocation7], 1 }
 0x445   :  { %712 = vsyncpa [#allocation7 + $0x1], 1 }

</bundles_post_ra>
